<compile_context>
chip_gen: v7x
topology: tpu7x:2x2x1
jax: 0.10.0
libtpu: 0.0.40
codegen_flags: <defaults>
</compile_context>

<pallas_src>
import functools

import jax
import jax.numpy as jnp
from jax.experimental import pallas as pl
from jax.experimental.pallas import tpu as pltpu


# ----------------------------------------------------------------------------
# Pallas kernel: fused GammaUnion forward for one tile of batch rows.
# ----------------------------------------------------------------------------
def gamma_union_kernel(alpha_ref, beta_ref, w1t_ref, w1b_ref, b1_ref,
                       w2_ref, b2_ref, w3_ref, b3_ref, out_ref):
    TB, N, E = alpha_ref.shape
    E2 = 2 * E

    alpha3 = alpha_ref[...]                               # (TB, N, E)
    beta3 = beta_ref[...]                                 # (TB, N, E)
    alpha2 = alpha3.reshape(TB * N, E)                    # 2D working set
    beta2 = beta3.reshape(TB * N, E)

    # Fused alpha/beta MLP (single matmul chain for both branches).
    # [alpha|beta] @ W1  ==  alpha @ W1_top + beta @ W1_bot  (no concat needed)
    h1 = jnp.maximum(
        jnp.dot(alpha2, w1t_ref[...], preferred_element_type=jnp.float32)
        + jnp.dot(beta2, w1b_ref[...], preferred_element_type=jnp.float32)
        + b1_ref[...], 0.0)                               # (rows, 2E)
    h2 = jnp.maximum(
        jnp.dot(h1, w2_ref[...], preferred_element_type=jnp.float32)
        + b2_ref[...], 0.0)                               # (rows, E)
    logits = (jnp.dot(h2, w3_ref[...], preferred_element_type=jnp.float32)
              + b3_ref[...])                              # (rows, 2E)
    # TODO(synk): dropout(p=0.5) on these logits is identity in eval mode.

    # softmax over the N axis (dim=1 of the reference), both branches at once
    logits3 = logits.reshape(TB, N, E2)
    logits3 = logits3 - jnp.max(logits3, axis=1, keepdims=True)
    p = jnp.exp(logits3)
    att = p * pl.reciprocal(jnp.sum(p, axis=1, keepdims=True), approx=True)

    att1 = att[..., :E]
    att2 = att[..., E:]

    k = alpha3 * att1                                     # (TB, N, E)
    o = 1.0 / (beta3 * att2)                              # (TB, N, E)
    ko = k * o
    s1 = jnp.sum(ko, axis=1)                              # (TB, E) = sum(k*o)
    s2 = jnp.sum(o * ko, axis=1)                          # (TB, E) = sum(o^2*k)
    k_sum = (s1 * s1) / s2
    o_sum = s1 / (k_sum * jnp.float32(N))                 # uses UNclamped k_sum

    k_sum = jnp.where(jnp.abs(k_sum) < 1e-4, jnp.float32(1e-4), k_sum)
    o_sum = jnp.where(jnp.abs(o_sum) < 1e-4, jnp.float32(1e-4), o_sum)

    # packed lane-dense output: [k_sum | o_sum]  -> (TB, 2E)
    out_ref[...] = jnp.concatenate([k_sum, o_sum], axis=-1)


# ----------------------------------------------------------------------------
# Wrapper around pallas_call
# ----------------------------------------------------------------------------
def _round_up(x, m):
    return (x + m - 1) // m * m


def _block_diag(a, b):
    za = jnp.zeros((a.shape[0], b.shape[1]), a.dtype)
    zb = jnp.zeros((b.shape[0], a.shape[1]), b.dtype)
    return jnp.concatenate(
        [jnp.concatenate([a, za], axis=1),
         jnp.concatenate([zb, b], axis=1)], axis=0)


@functools.partial(jax.jit, static_argnames=("tile_b",))
def gamma_union(alpha_emb, beta_emb, params, tile_b=512):
    B, N, E = alpha_emb.shape
    E2 = 2 * E

    # Fuse the two attention MLP branches (tiny weight tensors, done once).
    w1 = jnp.concatenate([params["wa1"], params["wb1"]], axis=1)     # (2E, 2E)
    w1t = w1[:E, :]                                                  # ( E, 2E)
    w1b = w1[E:, :]                                                  # ( E, 2E)
    b1 = jnp.concatenate([params["ba1"], params["bb1"]], axis=1)     # (1, 2E)
    w2 = _block_diag(params["wa2"], params["wb2"])                   # (2E,  E)
    b2 = jnp.concatenate([params["ba2"], params["bb2"]], axis=1)     # (1,  E)
    w3 = _block_diag(params["wa3"], params["wb3"])                   # ( E, 2E)
    b3 = jnp.concatenate([params["ba3"], params["bb3"]], axis=1)     # (1, 2E)

    # Row tiling: big tiles for throughput, clamped for small inputs, and capped
    # so the grid stays >= 2 on larger batches (v7x has 2 TCs sharing the
    # "parallel" grid axis).  tile stays a multiple of 8 (sublane).
    tb = min(tile_b, _round_up(B, 8), max(8, _round_up((B + 1) // 2, 8)))
    b_total = _round_up(B, tb)
    if b_total != B:
        # pad with ones so padded rows stay finite (sliced off below)
        pad = ((0, b_total - B), (0, 0), (0, 0))
        alpha_emb = jnp.pad(alpha_emb, pad, constant_values=1.0)
        beta_emb = jnp.pad(beta_emb, pad, constant_values=1.0)

    emb_spec = pl.BlockSpec((tb, N, E), lambda i: (i, 0, 0))
    full = lambda a: pl.BlockSpec(a.shape, lambda i: (0,) * a.ndim)
    out_spec = pl.BlockSpec((tb, E2), lambda i: (i, 0))

    packed = pl.pallas_call(
        gamma_union_kernel,
        out_shape=jax.ShapeDtypeStruct((b_total, E2), jnp.float32),
        grid_spec=pltpu.PrefetchScalarGridSpec(
            num_scalar_prefetch=0,
            grid=(b_total // tb,),
            in_specs=[emb_spec, emb_spec,
                      full(w1t), full(w1b), full(b1),
                      full(w2), full(b2),
                      full(w3), full(b3)],
            out_specs=out_spec,
        ),
        compiler_params=pltpu.CompilerParams(
            dimension_semantics=("parallel",),
            vmem_limit_bytes=32 * 1024 * 1024),
    )(alpha_emb, beta_emb, w1t, w1b, b1, w2, b2, w3, b3)

    return packed[:B, :E], packed[:B, E:]


# ----------------------------------------------------------------------------
# Parameter construction (PyTorch-style Linear init) and pure-JAX reference
# ----------------------------------------------------------------------------
def make_params(key, emb_dim):
    d = emb_dim
    keys = jax.random.split(key, 12)

    def linear(kw, kb, fan_in, fan_out):
        bound = 1.0 / (fan_in ** 0.5)
        w = jax.random.uniform(kw, (fan_in, fan_out), jnp.float32, -bound, bound)
        b = jax.random.uniform(kb, (1, fan_out), jnp.float32, -bound, bound)
        return w, b

    wa1, ba1 = linear(keys[0], keys[1], 2 * d, d)
    wa2, ba2 = linear(keys[2], keys[3], d, d // 2)
    wa3, ba3 = linear(keys[4], keys[5], d // 2, d)
    wb1, bb1 = linear(keys[6], keys[7], 2 * d, d)
    wb2, bb2 = linear(keys[8], keys[9], d, d // 2)
    wb3, bb3 = linear(keys[10], keys[11], d // 2, d)
    return dict(wa1=wa1, ba1=ba1, wa2=wa2, ba2=ba2, wa3=wa3, ba3=ba3,
                wb1=wb1, bb1=bb1, wb2=wb2, bb2=bb2, wb3=wb3, bb3=bb3)


def reference_gamma_union(alpha_emb, beta_emb, params):
    """Mirrors the PyTorch GammaUnion.forward (dropout = identity)."""
    all_emb = jnp.concatenate([alpha_emb, beta_emb], axis=-1)

    def branch(w1, b1, w2, b2, w3, b3):
        h1 = jax.nn.relu(all_emb @ w1 + b1[0])
        h2 = jax.nn.relu(h1 @ w2 + b2[0])
        logits = h2 @ w3 + b3[0]
        return jax.nn.softmax(logits, axis=1)

    att1 = branch(params["wa1"], params["ba1"], params["wa2"], params["ba2"],
                  params["wa3"], params["ba3"])
    att2 = branch(params["wb1"], params["bb1"], params["wb2"], params["bb2"],
                  params["wb3"], params["bb3"])
    k = alpha_emb * att1
    o = 1.0 / (beta_emb * att2)
    k_sum = jnp.sum(k * o, axis=1) ** 2 / jnp.sum(o ** 2 * k, axis=1)
    o_sum = jnp.sum(k * o, axis=1) / (k_sum * o.shape[1])
    k_sum = jnp.where(jnp.abs(k_sum) < 1e-4, 1e-4, k_sum)
    o_sum = jnp.where(jnp.abs(o_sum) < 1e-4, 1e-4, o_sum)
    return k_sum, o_sum


if __name__ == "__main__":
    key = jax.random.PRNGKey(0)
    B, N, E = 6, 8, 32            # small shapes; fused lane dim = 2E = 64
    k_a, k_b, k_p = jax.random.split(key, 3)
    params = make_params(k_p, E)

    # Gamma-style positive embeddings, bounded away from zero so 1/(beta*att)
    # is well-conditioned.
    alpha_emb = jax.random.uniform(k_a, (B, N, E), jnp.float32, 0.5, 1.5)
    beta_emb = jax.random.uniform(k_b, (B, N, E), jnp.float32, 0.5, 1.5)

    k_out, o_out = gamma_union(alpha_emb, beta_emb, params)
    jax.block_until_ready((k_out, o_out))

    # sanity check against the pure-JAX reference
    k_ref, o_ref = reference_gamma_union(alpha_emb, beta_emb, params)
    assert k_out.shape == (B, E) and o_out.shape == (B, E)
    assert jnp.allclose(k_out, k_ref, rtol=2e-2, atol=2e-3), \
        float(jnp.max(jnp.abs(k_out - k_ref)))
    assert jnp.allclose(o_out, o_ref, rtol=2e-2, atol=2e-3), \
        float(jnp.max(jnp.abs(o_out - o_ref)))

    print("KERNEL_OK")
</pallas_src>

<mosaic_0001>
module attributes {stable_mosaic.version = 11 : i64} {
  func.func @gamma_union_kernel(%arg0: i32, %arg1: memref<8x8x32xf32, #tpu.memory_space<vmem>>, %arg2: memref<8x8x32xf32, #tpu.memory_space<vmem>>, %arg3: memref<32x64xf32, #tpu.memory_space<vmem>>, %arg4: memref<32x64xf32, #tpu.memory_space<vmem>>, %arg5: memref<1x64xf32, #tpu.memory_space<vmem>>, %arg6: memref<64x32xf32, #tpu.memory_space<vmem>>, %arg7: memref<1x32xf32, #tpu.memory_space<vmem>>, %arg8: memref<32x64xf32, #tpu.memory_space<vmem>>, %arg9: memref<1x64xf32, #tpu.memory_space<vmem>>, %arg10: memref<8x64xf32, #tpu.memory_space<vmem>>) attributes {dimension_semantics = [#tpu.dimension_semantics<parallel>], iteration_bounds = array<i64: 1>, scalar_prefetch = 0 : i64, scratch_operands = 0 : i64, tpu.core_type = #tpu.core_type<tc>, window_params = [{transform_indices = @transform_0, window_bounds = array<i64: 8, 8, 32>}, {transform_indices = @transform_1, window_bounds = array<i64: 8, 8, 32>}, {pipeline_mode = #tpu.pipeline_mode<synchronous>, transform_indices = @transform_2, window_bounds = array<i64: 32, 64>}, {pipeline_mode = #tpu.pipeline_mode<synchronous>, transform_indices = @transform_3, window_bounds = array<i64: 32, 64>}, {pipeline_mode = #tpu.pipeline_mode<synchronous>, transform_indices = @transform_4, window_bounds = array<i64: 1, 64>}, {pipeline_mode = #tpu.pipeline_mode<synchronous>, transform_indices = @transform_5, window_bounds = array<i64: 64, 32>}, {pipeline_mode = #tpu.pipeline_mode<synchronous>, transform_indices = @transform_6, window_bounds = array<i64: 1, 32>}, {pipeline_mode = #tpu.pipeline_mode<synchronous>, transform_indices = @transform_7, window_bounds = array<i64: 32, 64>}, {pipeline_mode = #tpu.pipeline_mode<synchronous>, transform_indices = @transform_8, window_bounds = array<i64: 1, 64>}, {transform_indices = @transform_9, window_bounds = array<i64: 8, 64>}]} {
    %c0 = arith.constant 0 : index
    %c0_0 = arith.constant 0 : index
    %c0_1 = arith.constant 0 : index
    %0 = vector.load %arg1[%c0, %c0_0, %c0_1] : memref<8x8x32xf32, #tpu.memory_space<vmem>>, vector<8x8x32xf32>
    %c0_2 = arith.constant 0 : index
    %c0_3 = arith.constant 0 : index
    %c0_4 = arith.constant 0 : index
    %1 = vector.load %arg2[%c0_2, %c0_3, %c0_4] : memref<8x8x32xf32, #tpu.memory_space<vmem>>, vector<8x8x32xf32>
    %2 = vector.shape_cast %0 : vector<8x8x32xf32> to vector<64x32xf32>
    %3 = vector.shape_cast %1 : vector<8x8x32xf32> to vector<64x32xf32>
    %c0_5 = arith.constant 0 : index
    %c0_6 = arith.constant 0 : index
    %4 = vector.load %arg3[%c0_5, %c0_6] : memref<32x64xf32, #tpu.memory_space<vmem>>, vector<32x64xf32>
    %cst = arith.constant dense<0.000000e+00> : vector<64x64xf32>
    %5 = tpu.matmul %2, %4, %cst {dimension_numbers = #tpu.dot_dimension_numbers<[1], [0], [0], [1], [0, 0, 1, 1], [], []>} : vector<64x32xf32>, vector<32x64xf32>, vector<64x64xf32> -> vector<64x64xf32>
    %c0_7 = arith.constant 0 : index
    %c0_8 = arith.constant 0 : index
    %6 = vector.load %arg4[%c0_7, %c0_8] : memref<32x64xf32, #tpu.memory_space<vmem>>, vector<32x64xf32>
    %cst_9 = arith.constant dense<0.000000e+00> : vector<64x64xf32>
    %7 = tpu.matmul %3, %6, %cst_9 {dimension_numbers = #tpu.dot_dimension_numbers<[1], [0], [0], [1], [0, 0, 1, 1], [], []>} : vector<64x32xf32>, vector<32x64xf32>, vector<64x64xf32> -> vector<64x64xf32>
    %8 = arith.addf %5, %7 : vector<64x64xf32>
    %c0_10 = arith.constant 0 : index
    %c0_11 = arith.constant 0 : index
    %9 = vector.load %arg5[%c0_10, %c0_11] : memref<1x64xf32, #tpu.memory_space<vmem>>, vector<1x64xf32>
    %10 = vector.broadcast %9 : vector<1x64xf32> to vector<64x64xf32>
    %11 = arith.addf %8, %10 : vector<64x64xf32>
    %cst_12 = arith.constant 0.000000e+00 : f32
    %12 = vector.broadcast %cst_12 : f32 to vector<64x64xf32>
    %13 = arith.maximumf %11, %12 : vector<64x64xf32>
    %c0_13 = arith.constant 0 : index
    %c0_14 = arith.constant 0 : index
    %14 = vector.load %arg6[%c0_13, %c0_14] : memref<64x32xf32, #tpu.memory_space<vmem>>, vector<64x32xf32>
    %cst_15 = arith.constant dense<0.000000e+00> : vector<64x32xf32>
    %15 = tpu.matmul %13, %14, %cst_15 {dimension_numbers = #tpu.dot_dimension_numbers<[1], [0], [0], [1], [0, 0, 1, 1], [], []>} : vector<64x64xf32>, vector<64x32xf32>, vector<64x32xf32> -> vector<64x32xf32>
    %c0_16 = arith.constant 0 : index
    %c0_17 = arith.constant 0 : index
    %16 = vector.load %arg7[%c0_16, %c0_17] : memref<1x32xf32, #tpu.memory_space<vmem>>, vector<1x32xf32>
    %17 = vector.broadcast %16 : vector<1x32xf32> to vector<64x32xf32>
    %18 = arith.addf %15, %17 : vector<64x32xf32>
    %cst_18 = arith.constant 0.000000e+00 : f32
    %19 = vector.broadcast %cst_18 : f32 to vector<64x32xf32>
    %20 = arith.maximumf %18, %19 : vector<64x32xf32>
    %c0_19 = arith.constant 0 : index
    %c0_20 = arith.constant 0 : index
    %21 = vector.load %arg8[%c0_19, %c0_20] : memref<32x64xf32, #tpu.memory_space<vmem>>, vector<32x64xf32>
    %cst_21 = arith.constant dense<0.000000e+00> : vector<64x64xf32>
    %22 = tpu.matmul %20, %21, %cst_21 {dimension_numbers = #tpu.dot_dimension_numbers<[1], [0], [0], [1], [0, 0, 1, 1], [], []>} : vector<64x32xf32>, vector<32x64xf32>, vector<64x64xf32> -> vector<64x64xf32>
    %c0_22 = arith.constant 0 : index
    %c0_23 = arith.constant 0 : index
    %23 = vector.load %arg9[%c0_22, %c0_23] : memref<1x64xf32, #tpu.memory_space<vmem>>, vector<1x64xf32>
    %24 = vector.broadcast %23 : vector<1x64xf32> to vector<64x64xf32>
    %25 = arith.addf %22, %24 : vector<64x64xf32>
    %26 = vector.shape_cast %25 : vector<64x64xf32> to vector<8x8x64xf32>
    %cst_24 = arith.constant dense<0xFF800000> : vector<8x64xf32>
    %27 = vector.multi_reduction <maximumf>, %26, %cst_24 [1] : vector<8x8x64xf32> to vector<8x64xf32>
    %28 = vector.shape_cast %27 : vector<8x64xf32> to vector<8x1x64xf32>
    %29 = vector.broadcast %28 : vector<8x1x64xf32> to vector<8x8x64xf32>
    %30 = arith.subf %26, %29 : vector<8x8x64xf32>
    %31 = math.exp %30 : vector<8x8x64xf32>
    %cst_25 = arith.constant dense<0.000000e+00> : vector<8x64xf32>
    %32 = vector.multi_reduction <add>, %31, %cst_25 [1] : vector<8x8x64xf32> to vector<8x64xf32>
    %33 = vector.shape_cast %32 : vector<8x64xf32> to vector<8x1x64xf32>
    %34 = tpu.reciprocal %33 {approx = true} : vector<8x1x64xf32> -> vector<8x1x64xf32>
    %35 = vector.broadcast %34 : vector<8x1x64xf32> to vector<8x8x64xf32>
    %36 = arith.mulf %31, %35 : vector<8x8x64xf32>
    %37 = vector.extract_strided_slice %36 {offsets = [0, 0, 0], sizes = [8, 8, 32], strides = [1, 1, 1]} : vector<8x8x64xf32> to vector<8x8x32xf32>
    %38 = vector.extract_strided_slice %36 {offsets = [0, 0, 32], sizes = [8, 8, 32], strides = [1, 1, 1]} : vector<8x8x64xf32> to vector<8x8x32xf32>
    %39 = arith.mulf %0, %37 : vector<8x8x32xf32>
    %40 = arith.mulf %1, %38 : vector<8x8x32xf32>
    %cst_26 = arith.constant 1.000000e+00 : f32
    %41 = vector.broadcast %cst_26 : f32 to vector<8x8x32xf32>
    %42 = arith.divf %41, %40 : vector<8x8x32xf32>
    %43 = arith.mulf %39, %42 : vector<8x8x32xf32>
    %cst_27 = arith.constant dense<0.000000e+00> : vector<8x32xf32>
    %44 = vector.multi_reduction <add>, %43, %cst_27 [1] : vector<8x8x32xf32> to vector<8x32xf32>
    %45 = arith.mulf %42, %43 : vector<8x8x32xf32>
    %cst_28 = arith.constant dense<0.000000e+00> : vector<8x32xf32>
    %46 = vector.multi_reduction <add>, %45, %cst_28 [1] : vector<8x8x32xf32> to vector<8x32xf32>
    %47 = arith.mulf %44, %44 : vector<8x32xf32>
    %48 = arith.divf %47, %46 : vector<8x32xf32>
    %cst_29 = arith.constant 8.000000e+00 : f32
    %49 = vector.broadcast %cst_29 : f32 to vector<8x32xf32>
    %50 = arith.mulf %48, %49 : vector<8x32xf32>
    %51 = arith.divf %44, %50 : vector<8x32xf32>
    %52 = math.absf %48 : vector<8x32xf32>
    %cst_30 = arith.constant 9.99999974E-5 : f32
    %53 = vector.broadcast %cst_30 : f32 to vector<8x32xf32>
    %54 = arith.cmpf olt, %52, %53 : vector<8x32xf32>
    %cst_31 = arith.constant 9.99999974E-5 : f32
    %55 = vector.broadcast %cst_31 : f32 to vector<8x32xf32>
    %56 = arith.select %54, %55, %48 : vector<8x32xi1>, vector<8x32xf32>
    %57 = math.absf %51 : vector<8x32xf32>
    %cst_32 = arith.constant 9.99999974E-5 : f32
    %58 = vector.broadcast %cst_32 : f32 to vector<8x32xf32>
    %59 = arith.cmpf olt, %57, %58 : vector<8x32xf32>
    %cst_33 = arith.constant 9.99999974E-5 : f32
    %60 = vector.broadcast %cst_33 : f32 to vector<8x32xf32>
    %61 = arith.select %59, %60, %51 : vector<8x32xi1>, vector<8x32xf32>
    %62 = tpu.concatenate %56, %61 in 1 : vector<8x32xf32>, vector<8x32xf32> -> vector<8x64xf32>
    %c0_34 = arith.constant 0 : index
    %c0_35 = arith.constant 0 : index
    %63 = vector.load %arg10[%c0_34, %c0_35] : memref<8x64xf32, #tpu.memory_space<vmem>>, vector<8x64xf32>
    tpu.vector_store %arg10[%c0_34, %c0_35], %62 {strides = array<i32>} : memref<8x64xf32, #tpu.memory_space<vmem>>, vector<8x64xf32>,
    return
  }
  func.func @transform_0(%arg0: i32) -> (i32, i32, i32) {
    %c0_i32 = arith.constant 0 : i32
    %c0_i32_0 = arith.constant 0 : i32
    %c0_i32_1 = arith.constant 0 : i32
    return %arg0, %c0_i32, %c0_i32_0 : i32, i32, i32
  }
  func.func @transform_1(%arg0: i32) -> (i32, i32, i32) {
    %c0_i32 = arith.constant 0 : i32
    %c0_i32_0 = arith.constant 0 : i32
    %c0_i32_1 = arith.constant 0 : i32
    return %arg0, %c0_i32, %c0_i32_0 : i32, i32, i32
  }
  func.func @transform_2(%arg0: i32) -> (i32, i32) {
    %c0_i32 = arith.constant 0 : i32
    %c0_i32_0 = arith.constant 0 : i32
    %c0_i32_1 = arith.constant 0 : i32
    return %c0_i32, %c0_i32_0 : i32, i32
  }
  func.func @transform_3(%arg0: i32) -> (i32, i32) {
    %c0_i32 = arith.constant 0 : i32
    %c0_i32_0 = arith.constant 0 : i32
    %c0_i32_1 = arith.constant 0 : i32
    return %c0_i32, %c0_i32_0 : i32, i32
  }
  func.func @transform_4(%arg0: i32) -> (i32, i32) {
    %c0_i32 = arith.constant 0 : i32
    %c0_i32_0 = arith.constant 0 : i32
    %c0_i32_1 = arith.constant 0 : i32
    return %c0_i32, %c0_i32_0 : i32, i32
  }
  func.func @transform_5(%arg0: i32) -> (i32, i32) {
    %c0_i32 = arith.constant 0 : i32
    %c0_i32_0 = arith.constant 0 : i32
    %c0_i32_1 = arith.constant 0 : i32
    return %c0_i32, %c0_i32_0 : i32, i32
  }
  func.func @transform_6(%arg0: i32) -> (i32, i32) {
    %c0_i32 = arith.constant 0 : i32
    %c0_i32_0 = arith.constant 0 : i32
    %c0_i32_1 = arith.constant 0 : i32
    return %c0_i32, %c0_i32_0 : i32, i32
  }
  func.func @transform_7(%arg0: i32) -> (i32, i32) {
    %c0_i32 = arith.constant 0 : i32
    %c0_i32_0 = arith.constant 0 : i32
    %c0_i32_1 = arith.constant 0 : i32
    return %c0_i32, %c0_i32_0 : i32, i32
  }
  func.func @transform_8(%arg0: i32) -> (i32, i32) {
    %c0_i32 = arith.constant 0 : i32
    %c0_i32_0 = arith.constant 0 : i32
    %c0_i32_1 = arith.constant 0 : i32
    return %c0_i32, %c0_i32_0 : i32, i32
  }
  func.func @transform_9(%arg0: i32) -> (i32, i32) {
    %c0_i32 = arith.constant 0 : i32
    %c0_i32_0 = arith.constant 0 : i32
    return %arg0, %c0_i32 : i32, i32
  }
}

</mosaic_0001>

<bundles_post_ra>
// kernel: gamma_union.1
= control target key start
LH: loop header
LB: loop body
LE: loop exit
PB: predicated region body
PF: predicated region fallthrough
CT: control target
= control target key end

     0   :  { %vm56_vm0 = vcmask 261120   ;;  %vm353_vm1 = vcmask 523264   ;;  %vm1079_vm2 = vcmask 1041409   ;;  %vm1081_vm3 = vcmask 1042434   ;;  %s1886_s3 = inlined_call_operand.vmem [shape: f32[32,64], index: 3, kind: input, shape index: {}]   ;;  %s1887_s1 = inlined_call_operand.vmem [shape: f32[8,8,32], index: 1, kind: input, shape index: {}]   ;;  %s1888_s2 = inlined_call_operand.vmem [shape: f32[32,64], index: 2, kind: input, shape index: {}]   ;;  %s1889_s5 = inlined_call_operand.vmem [shape: f32[64,32], index: 5, kind: input, shape index: {}]   ;;  %s1890_s0 = inlined_call_operand.vmem [shape: f32[8,8,32], index: 0, kind: input, shape index: {}]   ;;  %s1891_s7 = inlined_call_operand.vmem [shape: f32[32,64], index: 7, kind: input, shape index: {}]   ;;  %s1892_s4 = inlined_call_operand.vmem [shape: f32[1,64], index: 4, kind: input, shape index: {}]   ;;  %s1893_s6 = inlined_call_operand.vmem [shape: f32[1,32], index: 6, kind: input, shape index: {}]   ;;  %s1894_s8 = inlined_call_operand.vmem [shape: f32[1,64], index: 8, kind: input, shape index: {}]   ;;  %s1895_s9 = inlined_call_operand.vmem [shape: f32[8,64], index: 9, kind: output, shape index: {}]  }
   0x1   :  { %v52_v0 = vld [vmem:[%s1886_s3] sm:$0xff]  ;;  %v53_v1 = vld [vmem:[%s1886_s3 + $0x8] sm:$0xff]  ;;  %v54_v2 = vld [vmem:[%s1886_s3 + $0x10] sm:$0xff]  ;;  %vm1083_vm4 = vcmask 1043459   ;;  %vm1085_vm6 = vcmask 1044484   ;;  %vm1087_vm9 = vcmask 1045509  }
   0x2   :  { %v1293_v3 = vpack.c.bf16 %v53_v1, %v52_v0  ;;  %v55_v4 = vld [vmem:[%s1886_s3 + $0x18] sm:$0xff]  ;;  %v1498_v5 = vld [vmem:[%s1887_s1] sm:$0xff]  ;;  %v49_v8 = vld [vmem:[%s1888_s2 + $0x8] sm:$0xff]  ;;  %vm1089_vm10 = vcmask 1046534   ;;  %vm1091_vm14 = vcmask 1047559  }
   0x3   :  { %v1297_v6 = vpack.c.bf16 %v55_v4, %v54_v2  ;;  %1213 = vmatprep.mubr.msk.f32.mxu0 %vm56_vm0, %v1498_v5  ;;  %v48_v7 = vld [vmem:[%s1888_s2] sm:$0xff]  ;;  %v50_v10 = vld [vmem:[%s1888_s2 + $0x10] sm:$0xff]  ;;  %v51_v11 = vld [vmem:[%s1888_s2 + $0x18] sm:$0xff] }
   0x4   :  { %1294 = vmatprep.subr.bf16.mxu0 %v1293_v3  ;;  %v1301_v9 = vpack.c.bf16 %v49_v8, %v48_v7  ;;  %v1517_v12 = vld [vmem:[%s1887_s1 + $0x8] sm:$0xff]  ;;  %v338_v13 = vld [vmem:[%s1889_s5] sm:$0xff]  ;;  %v1528_v15 = vld [vmem:[%s1887_s1 + $0x10] sm:$0xff]  ;;  %v1305_v16 = vpack.c.bf16 %v51_v11, %v50_v10 }
   0x5   :  { %1296 = vmatpush3.bf16.msra.mxu0 %v1293_v3  ;;  %v339_v14 = vld [vmem:[%s1889_s5 + $0x8] sm:$0xff]  ;;  %v340_v18 = vld [vmem:[%s1889_s5 + $0x10] sm:$0xff]  ;;  %v341_v19 = vld [vmem:[%s1889_s5 + $0x18] sm:$0xff] }
   0x6   :  { %1298 = vmatprep.subr.bf16.mxu0 %v1297_v6  ;;  %v1309_v17 = vpack.c.bf16 %v339_v14, %v338_v13  ;;  %v1543_v20 = vld [vmem:[%s1887_s1 + $0x18] sm:$0xff]  ;;  %v1313_v21 = vpack.c.bf16 %v341_v19, %v340_v18  ;;  %v1548_v22 = vld [vmem:[%s1887_s1 + $0x20] sm:$0xff]  ;;  %v343_v24 = vld [vmem:[%s1889_s5 + $0x28] sm:$0xff] }
   0x7   :  { %v342_v23 = vld [vmem:[%s1889_s5 + $0x20] sm:$0xff]  ;;  %v1563_v25 = vld [vmem:[%s1887_s1 + $0x28] sm:$0xff]  ;;  %v1568_v27 = vld [vmem:[%s1887_s1 + $0x30] sm:$0xff] }
   0x8   :  { %1333 = vmatprep.subr.bf16.mxu1 %v1309_v17  ;;  %v1317_v26 = vpack.c.bf16 %v343_v24, %v342_v23  ;;  %v1577_v28 = vld [vmem:[%s1887_s1 + $0x38] sm:$0xff]  ;;  %v1582_v29 = vld [vmem:[%s1890_s0] sm:$0xff]  ;;  %v1591_v30 = vld [vmem:[%s1890_s0 + $0x8] sm:$0xff]  ;;  %s1432_s1 = smov 32  }
   0x9   :  { %1300 = vmatpush3.bf16.msra.mxu0 %v1297_v6  ;;  %1337 = vmatpush3.bf16.msra.mxu1 %v1309_v17  ;;  %v1596_v31 = vld [vmem:[%s1890_s0 + $0x10] sm:$0xff]  ;;  %v1605_v32 = vld [vmem:[%s1890_s0 + $0x18] sm:$0xff]  ;;  %v1610_v33 = vld [vmem:[%s1890_s0 + $0x20] sm:$0xff] }
   0xa   :  { %1302 = vmatprep.subr.bf16.mxu0 %v1301_v9  ;;  %1334 = vmatprep.subr.bf16.mxu1 %v1313_v21  ;;  %v1619_v34 = vld [vmem:[%s1890_s0 + $0x28] sm:$0xff]  ;;  %v1624_v35 = vld [vmem:[%s1890_s0 + $0x30] sm:$0xff]  ;;  %v1633_v36 = vld [vmem:[%s1890_s0 + $0x38] sm:$0xff] }
   0xb   :  { %v344_v37 = vld [vmem:[%s1889_s5 + $0x30] sm:$0xff]  ;;  %v345_v38 = vld [vmem:[%s1889_s5 + $0x38] sm:$0xff]  ;;  %v491_v40 = vld [vmem:[%s1891_s7] sm:$0xff] }
   0xc   :  { %1214 = vmatmul.mubr.msk.f32.vlgmr.msra.gmra.mrb[0].mxu0 %vm56_vm0, %v1517_v12  ;;  %v1321_v39 = vpack.c.bf16 %v345_v38, %v344_v37  ;;  %v492_v41 = vld [vmem:[%s1891_s7 + $0x8] sm:$0xff]  ;;  %v1134_v43 = vld [vmem:[%s1892_s4] ss:$0 sm:$0xff]  ;;  %v493_v4 = vld [vmem:[%s1891_s7 + $0x10] sm:$0xff] }
   0xd   :  { %1304 = vmatpush3.bf16.msra.mxu0 %v1301_v9  ;;  %1216 = vmatprep.mubr.msk.f32.mxu0 %vm56_vm0, %v1528_v15  ;;  %v1325_v42 = vpack.c.bf16 %v492_v41, %v491_v40  ;;  %v494_v6 = vld [vmem:[%s1891_s7 + $0x18] sm:$0xff]  ;;  %v1135_v8 = vld [vmem:[%s1893_s6] ss:$0 sm:$0xff] }
   0xe   :  { %1306 = vmatprep.subr.bf16.mxu0 %v1305_v16  ;;  %1338 = vmatpush3.bf16.msra.mxu1 %v1313_v21  ;;  %v1329_v7 = vpack.c.bf16 %v494_v6, %v493_v4 }
   0xf   :  { %1335 = vmatprep.subr.bf16.mxu1 %v1317_v26 }
  0x10   :  { %1217 = vmatmul.mubr.msk.f32.gmra.mrb[2].mxu0 %vm56_vm0, %v1543_v20 }
  0x11   :  { %1219 = vmatprep.mubr.msk.f32.mxu0 %vm56_vm0, %v1548_v22  ;;  %1308 = vmatpush3.bf16.msra.mxu0 %v1305_v16 }
  0x12   :  { %1310 = vmatprep.subr.bf16.mxu0 %v1309_v17  ;;  %1339 = vmatpush3.bf16.msra.mxu1 %v1317_v26 }
  0x13   :  { %1336 = vmatprep.subr.bf16.mxu1 %v1321_v39 }
  0x14   :  { %1220 = vmatmul.mubr.msk.f32.gmra.mrb[4].mxu0 %vm56_vm0, %v1563_v25 }
  0x15   :  { %1222 = vmatprep.mubr.msk.f32.mxu0 %vm56_vm0, %v1568_v27 }
  0x16   :  { %1340 = vmatpush3.bf16.msra.mxu1 %v1321_v39 }
  0x17   :  { %1326 = vmatprep.subr.bf16.mxu1 %v1325_v42 }
  0x18   :  { %1223 = vmatmul.mubr.msk.f32.gmra.mrb[6].mxu0 %vm56_vm0, %v1577_v28 }
  0x19   :  { %1233 = vmatprep.mubr.msk.f32.mxu0 %vm56_vm0, %v1582_v29 }
  0x1c   :  { %1234 = vmatmul.mubr.msk.f32.vlgmr.msra.gmra.mrb[0].mxu0 %vm56_vm0, %v1591_v30 }
  0x1d   :  { %1236 = vmatprep.mubr.msk.f32.mxu0 %vm56_vm0, %v1596_v31  ;;  %1312 = vmatpush3.bf16.msra.mxu0 %v1309_v17 }
  0x1e   :  { %1314 = vmatprep.subr.bf16.mxu0 %v1313_v21 }
  0x20   :  { %1237 = vmatmul.mubr.msk.f32.gmra.mrb[2].mxu0 %vm56_vm0, %v1605_v32 }
  0x21   :  { %1239 = vmatprep.mubr.msk.f32.mxu0 %vm56_vm0, %v1610_v33  ;;  %1316 = vmatpush3.bf16.msra.mxu0 %v1313_v21 }
  0x22   :  { %1318 = vmatprep.subr.bf16.mxu0 %v1317_v26 }
  0x24   :  { %1240 = vmatmul.mubr.msk.f32.gmra.mrb[4].mxu0 %vm56_vm0, %v1619_v34 }
  0x25   :  { %1242 = vmatprep.mubr.msk.f32.mxu0 %vm56_vm0, %v1624_v35  ;;  %1320 = vmatpush3.bf16.msra.mxu0 %v1317_v26 }
  0x26   :  { %1322 = vmatprep.subr.bf16.mxu0 %v1321_v39 }
  0x28   :  { %1243 = vmatmul.mubr.msk.f32.gmra.mrb[6].mxu0 %vm56_vm0, %v1633_v36 }
  0x29   :  { %1324 = vmatpush3.bf16.msra.mxu0 %v1321_v39 }
  0xef   :  { %v1235_v44 = vpop.f32.mrb[0].mxu0 }
  0xf0   :  { %v323_v45 = vadd.f32 %v1235_v44, %v1134_v43  ;;  %v276_v46 = vpop.f32.mrb[1].mxu0 }
  0xf1   :  { %v322_v47 = vadd.f32 %v1134_v43, %v276_v46 }
  0xf2   :  { %v331_v50 = vmax.f32 %v323_v45, 0.0 }
  0xf3   :  { %v330_v48 = vmax.f32 %v322_v47, 0.0  ;;  %v1238_v49 = vpop.f32.mrb[2].mxu0 }
  0xf4   :  { %v325_v51 = vadd.f32 %v1238_v49, %v1134_v43  ;;  %v286_v52 = vpop.f32.mrb[3].mxu0 }
  0xf5   :  { %v324_v53 = vadd.f32 %v1134_v43, %v286_v52  ;;  %1261 = vmatprep.mubr.msk.f32.mxu0 %vm353_vm1, %v330_v48  ;;  %v1144_v48 = vld [vmem:[%s1894_s8] ss:$0 sm:$0xff]  ;;  %s1431_s8 = smov 96  }
  0xf6   :  { %1262 = vmatmul.mubr.msk.f32.vlgmr.msra.gmra.mrb[8].mxu0 %vm353_vm1, %v331_v50  ;;  %v333_v56 = vmax.f32 %v325_v51, 0.0 }
  0xf7   :  { %v332_v54 = vmax.f32 %v324_v53, 0.0  ;;  %v1241_v55 = vpop.f32.mrb[4].mxu0 }
  0xf8   :  { %v327_v57 = vadd.f32 %v1241_v55, %v1134_v43  ;;  %v296_v58 = vpop.f32.mrb[5].mxu0 }
  0xf9   :  { %v326_v59 = vadd.f32 %v1134_v43, %v296_v58  ;;  %1264 = vmatprep.mubr.msk.f32.mxu1 %vm353_vm1, %v332_v54 }
  0xfa   :  { %1265 = vmatmul.mubr.msk.f32.vlgmr.msra.gmra.mrb[0].mxu1 %vm353_vm1, %v333_v56  ;;  %v335_v62 = vmax.f32 %v327_v57, 0.0 }
  0xfb   :  { %v334_v60 = vmax.f32 %v326_v59, 0.0  ;;  %v1244_v61 = vpop.f32.mrb[6].mxu0  ;;  %1328 = vmatpush3.bf16.msra.mxu1 %v1325_v42 }
  0xfc   :  { %v329_v63 = vadd.f32 %v1244_v61, %v1134_v43  ;;  %v306_v0 = vpop.f32.mrb[7].mxu0  ;;  %1330 = vmatprep.subr.bf16.mxu1 %v1329_v7 }
  0xfd   :  { %v328_v1 = vadd.f32 %v1134_v43, %v306_v0  ;;  %1267 = vmatprep.mubr.msk.f32.mxu1 %vm353_vm1, %v334_v60 }
  0xfe   :  { %1268 = vmatmul.mubr.msk.f32.gmra.mrb[2].mxu1 %vm353_vm1, %v335_v62  ;;  %v337_v3 = vmax.f32 %v329_v63, 0.0 }
  0xff   :  { %v336_v2 = vmax.f32 %v328_v1, 0.0  ;;  %1332 = vmatpush3.bf16.msra.mxu1 %v1329_v7 }
 0x101   :  { %1270 = vmatprep.mubr.msk.f32.mxu1 %vm353_vm1, %v336_v2 }
 0x102   :  { %1271 = vmatmul.mubr.msk.f32.gmra.mrb[4].mxu1 %vm353_vm1, %v337_v3 }
 0x1c9   :  { %v1263_v9 = vpop.f32.mrb[8].mxu0 }
 0x1ca   :  { %v450_v10 = vadd.f32 %v1263_v9, %v1135_v8  ;;  %v444_v11 = vpop.f32.mrb[9].mxu0 }
 0x1cb   :  { %v445_v13 = vadd.f32 %v1135_v8, %v444_v11 }
 0x1cc   :  { %v484_v17 = vmax.f32 %v450_v10, 0.0 }
 0x1cd   :  { %v483_v14 = vmax.f32 %v445_v13, 0.0  ;;  %v1266_v16 = vpop.f32.mrb[0].mxu1 }
 0x1ce   :  { %v460_v18 = vadd.f32 %v1266_v16, %v1135_v8  ;;  %v454_v19 = vpop.f32.mrb[1].mxu1 }
 0x1cf   :  { %v455_v21 = vadd.f32 %v1135_v8, %v454_v19  ;;  %1281 = vmatprep.mubr.msk.f32.mxu1 %vm56_vm0, %v483_v14 }
 0x1d0   :  { %1282 = vmatmul.mubr.msk.f32.vlgmr.msra.gmra.mrb[6].mxu1 %vm56_vm0, %v484_v17  ;;  %v486_v26 = vmax.f32 %v460_v18, 0.0 }
 0x1d1   :  { %v485_v23 = vmax.f32 %v455_v21, 0.0  ;;  %v1269_v24 = vpop.f32.mrb[2].mxu1 }
 0x1d2   :  { %v470_v37 = vadd.f32 %v1269_v24, %v1135_v8  ;;  %v464_v38 = vpop.f32.mrb[3].mxu1 }
 0x1d3   :  { %v465_v39 = vadd.f32 %v1135_v8, %v464_v38  ;;  %1284 = vmatprep.mubr.msk.f32.mxu1 %vm56_vm0, %v485_v23 }
 0x1d4   :  { %1285 = vmatmul.mubr.msk.f32.gmra.mrb[8].mxu1 %vm56_vm0, %v486_v26  ;;  %v488_v42 = vmax.f32 %v470_v37, 0.0 }
 0x1d5   :  { %v487_v40 = vmax.f32 %v465_v39, 0.0  ;;  %v1272_v41 = vpop.f32.mrb[4].mxu1 }
 0x1d6   :  { %v480_v43 = vadd.f32 %v1272_v41, %v1135_v8  ;;  %v474_v44 = vpop.f32.mrb[5].mxu1 }
 0x1d7   :  { %v475_v45 = vadd.f32 %v1135_v8, %v474_v44  ;;  %1287 = vmatprep.mubr.msk.f32.mxu1 %vm56_vm0, %v487_v40 }
 0x1d8   :  { %1288 = vmatmul.mubr.msk.f32.gmra.mrb[10].mxu1 %vm56_vm0, %v488_v42  ;;  %v490_v47 = vmax.f32 %v480_v43, 0.0 }
 0x1d9   :  { %v489_v46 = vmax.f32 %v475_v45, 0.0 }
 0x1db   :  { %1290 = vmatprep.mubr.msk.f32.mxu1 %vm56_vm0, %v489_v46 }
 0x1dc   :  { %1291 = vmatmul.mubr.msk.f32.gmra.mrb[12].mxu1 %vm56_vm0, %v490_v47 }
 0x2a3   :  { %v1283_v49 = vpop.f32.mrb[6].mxu1 }
 0x2a4   :  { %v598_v50 = vadd.f32 %v1283_v49, %v1144_v48  ;;  %v592_v51 = vpop.f32.mrb[7].mxu1 }
 0x2a5   :  { %v593_v52 = vadd.f32 %v1144_v48, %v592_v51 }
 0x2a6   :  { %v638_v53 = vsel %vm353_vm1, %v598_v50, -inf }
 0x2a7   :  { %v639_v54 = vrot.slane %v638_v53, 4  ;;  %v631_v55 = vsel %vm353_vm1, %v593_v52, -inf  ;;  %v1286_v56 = vpop.f32.mrb[8].mxu1 }
 0x2a8   :  { %v632_v57 = vrot.slane %v631_v55, 4  ;;  %v608_v58 = vadd.f32 %v1286_v56, %v1144_v48  ;;  %v602_v59 = vpop.f32.mrb[9].mxu1 }
 0x2a9   :  { %v640_v60 = vmax.f32 %v638_v53, %v639_v54  ;;  %v603_v61 = vadd.f32 %v1144_v48, %v602_v59 }
 0x2aa   :  { %v633_v62 = vmax.f32 %v631_v55, %v632_v57  ;;  %v652_v63 = vsel %vm353_vm1, %v608_v58, -inf }
 0x2ab   :  { %v641_v0 = vrot.slane %v640_v60, 2  ;;  %v653_v1 = vrot.slane %v652_v63, 4  ;;  %v645_v2 = vsel %vm353_vm1, %v603_v61, -inf  ;;  %v1289_v3 = vpop.f32.mrb[10].mxu1 }
 0x2ac   :  { %v634_v4 = vrot.slane %v633_v62, 2  ;;  %v646_v6 = vrot.slane %v645_v2, 4  ;;  %v618_v7 = vadd.f32 %v1289_v3, %v1144_v48  ;;  %v612_v8 = vpop.f32.mrb[11].mxu1 }
 0x2ad   :  { %v642_v9 = vmax.f32 %v640_v60, %v641_v0  ;;  %v654_v10 = vmax.f32 %v652_v63, %v653_v1  ;;  %v613_v11 = vadd.f32 %v1144_v48, %v612_v8 }
 0x2ae   :  { %v635_v13 = vmax.f32 %v633_v62, %v634_v4  ;;  %v647_v14 = vmax.f32 %v645_v2, %v646_v6  ;;  %v666_v16 = vsel %vm353_vm1, %v618_v7, -inf }
 0x2af   :  { %v643_v17 = vrot.slane %v642_v9, 1  ;;  %v655_v18 = vrot.slane %v654_v10, 2  ;;  %v667_v19 = vrot.slane %v666_v16, 4  ;;  %v659_v21 = vsel %vm353_vm1, %v613_v11, -inf  ;;  %v1292_v23 = vpop.f32.mrb[12].mxu1 }
 0x2b0   :  { %v636_v24 = vrot.slane %v635_v13, 1  ;;  %v648_v26 = vrot.slane %v647_v14, 2  ;;  %v660_v37 = vrot.slane %v659_v21, 4  ;;  %v628_v38 = vadd.f32 %v1292_v23, %v1144_v48  ;;  %v622_v39 = vpop.f32.mrb[13].mxu1 }
 0x2b1   :  { %v644_v40 = vmax.f32 %v642_v9, %v643_v17  ;;  %v656_v41 = vmax.f32 %v654_v10, %v655_v18  ;;  %v668_v42 = vmax.f32 %v666_v16, %v667_v19  ;;  %v623_v43 = vadd.f32 %v1144_v48, %v622_v39 }
 0x2b2   :  { %v637_v44 = vmax.f32 %v635_v13, %v636_v24  ;;  %v649_v45 = vmax.f32 %v647_v14, %v648_v26  ;;  %v661_v46 = vmax.f32 %v659_v21, %v660_v37  ;;  %v680_v47 = vsel %vm353_vm1, %v628_v38, -inf }
 0x2b3   :  { %v688_v49 = vsub.f32 %v598_v50, %v644_v40  ;;  %v657_v51 = vrot.slane %v656_v41, 1  ;;  %v669_v53 = vrot.slane %v668_v42, 2  ;;  %v681_v54 = vrot.slane %v680_v47, 4 }
 0x2b4   :  { %v687_v55 = vsub.f32 %v593_v52, %v637_v44  ;;  %v650_v56 = vrot.slane %v649_v45, 1  ;;  %v662_v57 = vrot.slane %v661_v46, 2  ;;  %v673_v59 = vsel %vm353_vm1, %v623_v43, -inf }
 0x2b5   :  { %v697_v60 = vmul.f32 1.442695, %v688_v49  ;;  %v658_v62 = vmax.f32 %v656_v41, %v657_v51  ;;  %v670_v63 = vmax.f32 %v668_v42, %v669_v53  ;;  %v682_v0 = vmax.f32 %v680_v47, %v681_v54 }
 0x2b6   :  { %v695_v1 = vmul.f32 1.442695, %v687_v55  ;;  %v651_v48 = vmax.f32 %v649_v45, %v650_v56  ;;  %v663_v2 = vmax.f32 %v661_v46, %v662_v57  ;;  %v674_v3 = vrot.slane %v673_v59, 4 }
 0x2b7   :  { %1351 = vpow2.f32 %v697_v60  ;;  %v690_v4 = vsub.f32 %v608_v58, %v658_v62  ;;  %v671_v6 = vrot.slane %v670_v63, 1  ;;  %v683_v50 = vrot.slane %v682_v0, 2 }
 0x2b8   :  { %1353 = vpow2.f32 %v695_v1  ;;  %v689_v8 = vsub.f32 %v603_v61, %v651_v48  ;;  %v664_v9 = vrot.slane %v663_v2, 1  ;;  %v675_v52 = vmax.f32 %v673_v59, %v674_v3 }
 0x2b9   :  { %v701_v10 = vmul.f32 1.442695, %v690_v4  ;;  %v672_v13 = vmax.f32 %v670_v63, %v671_v6  ;;  %v684_v14 = vmax.f32 %v682_v0, %v683_v50 }
 0x2ba   :  { %v699_v16 = vmul.f32 1.442695, %v689_v8  ;;  %v665_v17 = vmax.f32 %v663_v2, %v664_v9  ;;  %v676_v18 = vrot.slane %v675_v52, 2 }
 0x2bb   :  { %1355 = vpow2.f32 %v701_v10  ;;  %v692_v19 = vsub.f32 %v618_v7, %v672_v13  ;;  %v685_v21 = vrot.slane %v684_v14, 1 }
 0x2bc   :  { %1357 = vpow2.f32 %v699_v16  ;;  %v691_v23 = vsub.f32 %v613_v11, %v665_v17  ;;  %v677_v24 = vmax.f32 %v675_v52, %v676_v18 }
 0x2bd   :  { %v705_v26 = vmul.f32 1.442695, %v692_v19  ;;  %v686_v58 = vmax.f32 %v684_v14, %v685_v21 }
 0x2be   :  { %v703_v37 = vmul.f32 1.442695, %v691_v23  ;;  %v678_v39 = vrot.slane %v677_v24, 1 }
 0x2bf   :  { %1359 = vpow2.f32 %v705_v26  ;;  %v694_v61 = vsub.f32 %v628_v38, %v686_v58 }
 0x2c0   :  { %1361 = vpow2.f32 %v703_v37  ;;  %v679_v40 = vmax.f32 %v677_v24, %v678_v39 }
 0x2c1   :  { %v1688_v41 = vpop.eup %1351  ;;  %v709_v42 = vmul.f32 1.442695, %v694_v61 }
 0x2c2   :  { %v1690_v44 = vpop.eup %1353  ;;  %v718_v7 = vsel %vm353_vm1, %v1688_v41, 0.0  ;;  %v693_v45 = vsub.f32 %v623_v43, %v679_v40 }
 0x2c3   :  { %v719_v46 = vrot.slane %v718_v7, 4  ;;  %v711_v11 = vsel %vm353_vm1, %v1690_v44, 0.0  ;;  %1363 = vpow2.f32 %v709_v42 }
 0x2c4   :  { %v712_v47 = vrot.slane %v711_v11, 4  ;;  %v707_v49 = vmul.f32 1.442695, %v693_v45 }
 0x2c5   :  { %v1696_v51 = vpop.eup %1355  ;;  %v720_v38 = vadd.f32 %v719_v46, %v718_v7 }
 0x2c6   :  { %v1698_v53 = vpop.eup %1357  ;;  %v713_v54 = vadd.f32 %v712_v47, %v711_v11  ;;  %v732_v55 = vsel %vm353_vm1, %v1696_v51, 0.0  ;;  %1365 = vpow2.f32 %v707_v49 }
 0x2c7   :  { %v733_v56 = vrot.slane %v732_v55, 4  ;;  %v725_v43 = vsel %vm353_vm1, %v1698_v53, 0.0  ;;  %v721_v57 = vrot.slane %v720_v38, 2 }
 0x2c8   :  { %v714_v59 = vrot.slane %v713_v54, 2  ;;  %v726_v60 = vrot.slane %v725_v43, 4 }
 0x2c9   :  { %v1704_v62 = vpop.eup %1359  ;;  %v734_v63 = vadd.f32 %v733_v56, %v732_v55  ;;  %v722_v0 = vadd.f32 %v721_v57, %v720_v38 }
 0x2ca   :  { %v1706_v1 = vpop.eup %1361  ;;  %v727_v48 = vadd.f32 %v726_v60, %v725_v43  ;;  %v746_v2 = vsel %vm353_vm1, %v1704_v62, 0.0  ;;  %v715_v3 = vadd.f32 %v714_v59, %v713_v54 }
 0x2cb   :  { %v747_v4 = vrot.slane %v746_v2, 4  ;;  %v739_v6 = vsel %vm353_vm1, %v1706_v1, 0.0  ;;  %v723_v50 = vrot.slane %v722_v0, 1  ;;  %v735_v8 = vrot.slane %v734_v63, 2 }
 0x2cc   :  { %v728_v9 = vrot.slane %v727_v48, 2  ;;  %v740_v52 = vrot.slane %v739_v6, 4  ;;  %v716_v10 = vrot.slane %v715_v3, 1 }
 0x2cd   :  { %v1712_v13 = vpop.eup %1363  ;;  %v748_v14 = vadd.f32 %v747_v4, %v746_v2  ;;  %v724_v16 = vadd.f32 %v723_v50, %v722_v0  ;;  %v736_v17 = vadd.f32 %v735_v8, %v734_v63 }
 0x2ce   :  { %v741_v18 = vadd.f32 %v740_v52, %v739_v6  ;;  %v760_v19 = vsel %vm353_vm1, %v1712_v13, 0.0  ;;  %v717_v21 = vadd.f32 %v716_v10, %v715_v3  ;;  %v729_v23 = vadd.f32 %v728_v9, %v727_v48 }
 0x2cf   :  { %v749_v24 = vrot.slane %v748_v14, 2  ;;  %v761_v26 = vrot.slane %v760_v19, 4  ;;  %1367 = vrcp.f32 %v724_v16  ;;  %v737_v58 = vrot.slane %v736_v17, 1 }
 0x2d0   :  { %v1366_v37 = vpop.eup %1365  ;;  %v742_v39 = vrot.slane %v741_v18, 2  ;;  %1369 = vrcp.f32 %v717_v21  ;;  %v730_v61 = vrot.slane %v729_v23, 1 }
 0x2d1   :  { %v762_v40 = vadd.f32 %v761_v26, %v760_v19  ;;  %v753_v42 = vsel %vm353_vm1, %v1366_v37, 0.0  ;;  %v738_v7 = vadd.f32 %v737_v58, %v736_v17  ;;  %v750_v45 = vadd.f32 %v749_v24, %v748_v14 }
 0x2d2   :  { %v754_v46 = vrot.slane %v753_v42, 4  ;;  %v731_v11 = vadd.f32 %v730_v61, %v729_v23  ;;  %v743_v47 = vadd.f32 %v742_v39, %v741_v18 }
 0x2d3   :  { %v763_v49 = vrot.slane %v762_v40, 2  ;;  %1371 = vrcp.f32 %v738_v7  ;;  %v751_v38 = vrot.slane %v750_v45, 1 }
 0x2d4   :  { %v755_v54 = vadd.f32 %v754_v46, %v753_v42  ;;  %v744_v55 = vrot.slane %v743_v47, 1  ;;  %1373 = vrcp.f32 %v731_v11 }
 0x2d5   :  { %v752_v56 = vadd.f32 %v751_v38, %v750_v45  ;;  %v764_v43 = vadd.f32 %v763_v49, %v762_v40 }
 0x2d6   :  { %v756_v57 = vrot.slane %v755_v54, 2  ;;  %v745_v59 = vadd.f32 %v744_v55, %v743_v47 }
 0x2d7   :  { %v765_v60 = vrot.slane %v764_v43, 1 }
 0x2d8   :  { %1375 = vrcp.f32 %v745_v59  ;;  %v757_v63 = vadd.f32 %v756_v57, %v755_v54 }
 0x2d9   :  { %v1368_v0 = vpop.eup %1367  ;;  %1377 = vrcp.f32 %v752_v56  ;;  %v766_v48 = vadd.f32 %v765_v60, %v764_v43 }
 0x2da   :  { %v1370_v2 = vpop.eup %1369  ;;  %v776_v3 = vmul.f32 %v1368_v0, %v1688_v41  ;;  %v758_v4 = vrot.slane %v757_v63, 1 }
 0x2db   :  { %1379 = vrcp.f32 %v766_v48  ;;  %v775_v9 = vmul.f32 %v1370_v2, %v1690_v44 }
 0x2dc   :  { %801 = vrot.lane.b32.xlu0 %v776_v3, %s1431_s8  ;;  %v759_v6 = vadd.f32 %v758_v4, %v757_v63 }
 0x2dd   :  { %v1372_v50 = vpop.eup %1371  ;;  %v783_v11 = vmul.f32 %v775_v9, %v1582_v29 }
 0x2de   :  { %v778_v8 = vmul.f32 %v1372_v50, %v1696_v51  ;;  %1381 = vrcp.f32 %v759_v6  ;;  %v1374_v52 = vpop.eup %1373 }
 0x2df   :  { %v777_v14 = vmul.f32 %v1374_v52, %v1698_v53 }
 0x2e0   :  { %805 = vrot.lane.b32.xlu1 %v778_v8, %s1431_s8  ;;  %799 = vrot.lane.b32.xlu0 %v775_v9, %s1431_s8  ;;  %v786_v42 = vmul.f32 %v778_v8, %v1605_v32 }
 0x2e2   :  { %v1376_v10 = vpop.eup %1375 }
 0x2e3   :  { %v1378_v16 = vpop.eup %1377  ;;  %v779_v41 = vmul.f32 %v1376_v10, %v1706_v1 }
 0x2e4   :  { %803 = vrot.lane.b32.xlu1 %v777_v14, %s1431_s8  ;;  %v780_v17 = vmul.f32 %v1378_v16, %v1704_v62 }
 0x2e5   :  { %807 = vrot.lane.b32.xlu0 %v779_v41, %s1431_s8  ;;  %v1380_v18 = vpop.eup %1379  ;;  %v787_v38 = vmul.f32 %v779_v41, %v1610_v33 }
 0x2e6   :  { %v1726_v44 = vmul.f32 %v1380_v18, %v1712_v13  ;;  %v1744_v32 = vmul.f32 %v780_v17, %v1619_v34 }
 0x2e8   :  { %v1382_v19 = vpop.eup %1381  ;;  %809 = vrot.lane.b32.xlu1 %v780_v17, %s1431_s8  ;;  %v1755_v10 = vmul.f32 %v1726_v44, %v1633_v36 }
 0x2e9   :  { %v1723_v51 = vmul.f32 %v1382_v19, %v1366_v37  ;;  %v784_v37 = vmul.f32 %v776_v3, %v1591_v30  ;;  %v785_v30 = vmul.f32 %v777_v14, %v1596_v31 }
 0x2eb   :  { %811 = vrot.lane.b32.xlu0 %v1723_v51, %s1431_s8 }
 0x2ec   :  { %813 = vrot.lane.b32.xlu1 %v1726_v44, %s1431_s8 }
 0x34e   :  { %v802_v53 = vpop.permute.xlu0 %801 }
 0x34f   :  { %v824_v21 = vmul.f32 %v802_v53, %v1517_v12 }
 0x351   :  { %1383 = vrcp.f32 %v824_v21 }
 0x352   :  { %v806_v1 = vpop.permute.xlu1 %805  ;;  %v800_v23 = vpop.permute.xlu0 %799 }
 0x353   :  { %v826_v62 = vmul.f32 %v806_v1, %v1543_v20  ;;  %v823_v24 = vmul.f32 %v800_v23, %v1498_v5 }
 0x355   :  { %1385 = vrcp.f32 %v826_v62 }
 0x356   :  { %1387 = vrcp.f32 %v823_v24  ;;  %v804_v26 = vpop.permute.xlu1 %803 }
 0x357   :  { %v825_v13 = vmul.f32 %v804_v26, %v1528_v15  ;;  %v808_v58 = vpop.permute.xlu0 %807 }
 0x358   :  { %v827_v39 = vmul.f32 %v808_v58, %v1548_v22 }
 0x359   :  { %1389 = vrcp.f32 %v825_v13 }
 0x35a   :  { %v810_v61 = vpop.permute.xlu1 %809  ;;  %1391 = vrcp.f32 %v827_v39 }
 0x35b   :  { %v1384_v12 = vpop.eup %1383  ;;  %v828_v20 = vmul.f32 %v810_v61, %v1563_v25 }
 0x35c   :  { %v848_v40 = vmul.f32 %v1384_v12, %v784_v37 }
 0x35d   :  { %v812_v7 = vpop.permute.xlu0 %811  ;;  %1393 = vrcp.f32 %v828_v20 }
 0x35e   :  { %v862_v5 = vsel %vm56_vm0, %v848_v40, 0.0  ;;  %v912_v45 = vmul.f32 %v1384_v12, %v848_v40  ;;  %v829_v15 = vmul.f32 %v812_v7, %v1568_v27  ;;  %v814_v47 = vpop.permute.xlu1 %813 }
 0x35f   :  { %v1386_v46 = vpop.eup %1385  ;;  %v863_v22 = vrot.slane %v862_v5, 4  ;;  %v830_v31 = vmul.f32 %v814_v47, %v1577_v28 }
 0x360   :  { %v1388_v49 = vpop.eup %1387  ;;  %v926_v25 = vsel %vm56_vm0, %v912_v45, 0.0  ;;  %v850_v54 = vmul.f32 %v1386_v46, %v786_v42  ;;  %1395 = vrcp.f32 %v829_v15 }
 0x361   :  { %v864_v55 = vadd.f32 %v863_v22, %v862_v5  ;;  %v927_v56 = vrot.slane %v926_v25, 4  ;;  %v847_v43 = vmul.f32 %v1388_v49, %v783_v11  ;;  %1397 = vrcp.f32 %v830_v31 }
 0x362   :  { %v876_v27 = vsel %vm56_vm0, %v850_v54, 0.0  ;;  %v914_v29 = vmul.f32 %v1386_v46, %v850_v54  ;;  %v789_v46 = vmul.f32 %v1723_v51, %v1624_v35 }
 0x363   :  { %v1390_v57 = vpop.eup %1389  ;;  %v865_v59 = vrot.slane %v864_v55, 2  ;;  %v928_v60 = vadd.f32 %v927_v56, %v926_v25  ;;  %v877_v33 = vrot.slane %v876_v27, 4  ;;  %v855_v34 = vsel %vm56_vm0, %v847_v43, 0.0 }
 0x364   :  { %v940_v63 = vsel %vm56_vm0, %v914_v29, 0.0  ;;  %v856_v0 = vrot.slane %v855_v34, 4  ;;  %v911_v48 = vmul.f32 %v1388_v49, %v847_v43  ;;  %v849_v2 = vmul.f32 %v1390_v57, %v785_v30  ;;  %v1392_v17 = vpop.eup %1391 }
 0x365   :  { %v866_v3 = vadd.f32 %v865_v59, %v864_v55  ;;  %v929_v4 = vrot.slane %v928_v60, 2  ;;  %v878_v6 = vadd.f32 %v877_v33, %v876_v27  ;;  %v941_v50 = vrot.slane %v940_v63, 4 }
 0x366   :  { %v857_v8 = vadd.f32 %v856_v0, %v855_v34  ;;  %v919_v9 = vsel %vm56_vm0, %v911_v48, 0.0  ;;  %v869_v28 = vsel %vm56_vm0, %v849_v2, 0.0  ;;  %v913_v52 = vmul.f32 %v1390_v57, %v849_v2 }
 0x367   :  { %v867_v14 = vrot.slane %v866_v3, 1  ;;  %v930_v16 = vadd.f32 %v929_v4, %v928_v60  ;;  %v942_v41 = vadd.f32 %v941_v50, %v940_v63  ;;  %v920_v19 = vrot.slane %v919_v9, 4  ;;  %v1394_v37 = vpop.eup %1393 }
 0x368   :  { %v858_v18 = vrot.slane %v857_v8, 2  ;;  %v870_v53 = vrot.slane %v869_v28, 4  ;;  %v933_v21 = vsel %vm56_vm0, %v913_v52, 0.0  ;;  %v879_v23 = vrot.slane %v878_v6, 2 }
 0x369   :  { %v931_v1 = vrot.slane %v930_v16, 1  ;;  %v943_v62 = vrot.slane %v942_v41, 2  ;;  %v921_v26 = vadd.f32 %v920_v19, %v919_v9  ;;  %v934_v58 = vrot.slane %v933_v21, 4 }
 0x36a   :  { %v859_v24 = vadd.f32 %v858_v18, %v857_v8  ;;  %v871_v13 = vadd.f32 %v870_v53, %v869_v28  ;;  %v1758_v36 = vadd.f32 %v867_v14, %v866_v3  ;;  %v851_v61 = vmul.f32 %v1392_v17, %v787_v38  ;;  %v1396_v12 = vpop.eup %1395 }
 0x36b   :  { %v932_v44 = vadd.f32 %v931_v1, %v930_v16  ;;  %v944_v39 = vadd.f32 %v943_v62, %v942_v41  ;;  %v922_v42 = vrot.slane %v921_v26, 2  ;;  %v935_v7 = vadd.f32 %v934_v58, %v933_v21  ;;  %v1398_v33 = vpop.eup %1397 }
 0x36c   :  { %v860_v40 = vrot.slane %v859_v24, 1  ;;  %v872_v20 = vrot.slane %v871_v13, 2  ;;  %v883_v45 = vsel %vm56_vm0, %v851_v61, 0.0  ;;  %v915_v15 = vmul.f32 %v1392_v17, %v851_v61 }
 0x36d   :  { %1399 = vrcp.f32 %v932_v44  ;;  %v945_v5 = vrot.slane %v944_v39, 1  ;;  %v923_v11 = vadd.f32 %v922_v42, %v921_v26  ;;  %v936_v22 = vrot.slane %v935_v7, 2 }
 0x36e   :  { %v873_v30 = vadd.f32 %v872_v20, %v871_v13  ;;  %v884_v49 = vrot.slane %v883_v45, 4  ;;  %v947_v38 = vsel %vm56_vm0, %v915_v15, 0.0  ;;  %v852_v25 = vmul.f32 %v1394_v37, %v1744_v32 }
 0x36f   :  { %v946_v47 = vadd.f32 %v945_v5, %v944_v39  ;;  %v976_v54 = vmul.f32 %v1758_v36, %v1758_v36  ;;  %v880_v55 = vadd.f32 %v879_v23, %v878_v6  ;;  %v924_v56 = vrot.slane %v923_v11, 1 }
 0x370   :  { %v937_v43 = vadd.f32 %v936_v22, %v935_v7  ;;  %v1767_v27 = vadd.f32 %v860_v40, %v859_v24  ;;  %v885_v29 = vadd.f32 %v884_v49, %v883_v45  ;;  %v948_v31 = vrot.slane %v947_v38, 4 }
 0x371   :  { %v890_v35 = vsel %vm56_vm0, %v852_v25, 0.0  ;;  %v925_v51 = vadd.f32 %v924_v56, %v923_v11  ;;  %v874_v57 = vrot.slane %v873_v30, 1  ;;  %1401 = vrcp.f32 %v946_v47 }
 0x372   :  { %v938_v59 = vrot.slane %v937_v43, 1  ;;  %v891_v60 = vrot.slane %v890_v35, 4  ;;  %v949_v34 = vadd.f32 %v948_v31, %v947_v38  ;;  %v916_v32 = vmul.f32 %v1394_v37, %v852_v25 }
 0x373   :  { %v853_v63 = vmul.f32 %v1396_v12, %v789_v46  ;;  %1403 = vrcp.f32 %v925_v51  ;;  %v886_v48 = vrot.slane %v885_v29, 2  ;;  %v975_v8 = vmul.f32 %v1767_v27, %v1767_v27 }
 0x374   :  { %v939_v0 = vadd.f32 %v938_v59, %v937_v43  ;;  %v892_v2 = vadd.f32 %v891_v60, %v890_v35  ;;  %v950_v3 = vrot.slane %v949_v34, 2  ;;  %v954_v4 = vsel %vm56_vm0, %v916_v32, 0.0 }
 0x375   :  { %v897_v6 = vsel %vm56_vm0, %v853_v63, 0.0  ;;  %v917_v50 = vmul.f32 %v1396_v12, %v853_v63  ;;  %v955_v9 = vrot.slane %v954_v4, 4  ;;  %v854_v28 = vmul.f32 %v1398_v33, %v1755_v10 }
 0x376   :  { %1405 = vrcp.f32 %v939_v0  ;;  %v951_v14 = vadd.f32 %v950_v3, %v949_v34  ;;  %v898_v16 = vrot.slane %v897_v6, 4  ;;  %v881_v17 = vrot.slane %v880_v55, 1 }
 0x377   :  { %v1400_v52 = vpop.eup %1399  ;;  %v961_v41 = vsel %vm56_vm0, %v917_v50, 0.0  ;;  %v956_v19 = vadd.f32 %v955_v9, %v954_v4  ;;  %v918_v21 = vmul.f32 %v1398_v33, %v854_v28  ;;  %v1778_v1 = vadd.f32 %v874_v57, %v873_v30 }
 0x378   :  { %v1776_v18 = vmul.f32 %v1400_v52, %v976_v54  ;;  %v962_v53 = vrot.slane %v961_v41, 4  ;;  %v952_v23 = vrot.slane %v951_v14, 1  ;;  %v887_v62 = vadd.f32 %v886_v48, %v885_v29 }
 0x379   :  { %v893_v24 = vrot.slane %v892_v2, 2  ;;  %v957_v13 = vrot.slane %v956_v19, 2  ;;  %v968_v58 = vsel %vm56_vm0, %v918_v21, 0.0  ;;  %v1782_v39 = vadd.f32 %v881_v17, %v880_v55 }
 0x37a   :  { %v1000_v26 = vmul.f32 8.0, %v1776_v18  ;;  %v963_v10 = vadd.f32 %v962_v53, %v961_v41  ;;  %v953_v37 = vadd.f32 %v952_v23, %v951_v14  ;;  %v969_v44 = vrot.slane %v968_v58, 4 }
 0x37b   :  { %v894_v61 = vadd.f32 %v893_v24, %v892_v2  ;;  %v958_v12 = vadd.f32 %v957_v13, %v956_v19  ;;  %v899_v42 = vadd.f32 %v898_v16, %v897_v6  ;;  %v1402_v20 = vpop.eup %1401  ;;  %v888_v5 = vrot.slane %v887_v62, 1 }
 0x37c   :  { %1407 = vrcp.f32 %v1000_v26  ;;  %v964_v40 = vrot.slane %v963_v10, 2  ;;  %v970_v7 = vadd.f32 %v969_v44, %v968_v58  ;;  %v904_v45 = vsel %vm56_vm0, %v854_v28, 0.0 }
 0x37d   :  { %1409 = vrcp.f32 %v953_v37  ;;  %v1404_v15 = vpop.eup %1403  ;;  %v959_v46 = vrot.slane %v958_v12, 1  ;;  %v900_v30 = vrot.slane %v899_v42, 2  ;;  %v905_v22 = vrot.slane %v904_v45, 4 }
 0x37e   :  { %v965_v11 = vadd.f32 %v964_v40, %v963_v10  ;;  %v1785_v47 = vmul.f32 %v1404_v15, %v975_v8  ;;  %v977_v49 = vmul.f32 %v1778_v1, %v1778_v1  ;;  %v971_v38 = vrot.slane %v970_v7, 2 }
 0x37f   :  { %v895_v25 = vrot.slane %v894_v61, 1  ;;  %v960_v55 = vadd.f32 %v959_v46, %v958_v12  ;;  %v901_v43 = vadd.f32 %v900_v30, %v899_v42  ;;  %v906_v29 = vadd.f32 %v905_v22, %v904_v45 }
 0x380   :  { %v1406_v54 = vpop.eup %1405  ;;  %v966_v56 = vrot.slane %v965_v11, 1  ;;  %v999_v31 = vmul.f32 8.0, %v1785_v47  ;;  %v972_v51 = vadd.f32 %v971_v38, %v970_v7  ;;  %v1792_v57 = vadd.f32 %v888_v5, %v887_v62 }
 0x381   :  { %v1790_v35 = vmul.f32 %v1406_v54, %v977_v49  ;;  %1411 = vrcp.f32 %v960_v55  ;;  %v907_v60 = vrot.slane %v906_v29, 2  ;;  %v978_v33 = vmul.f32 %v1782_v39, %v1782_v39 }
 0x382   :  { %v967_v59 = vadd.f32 %v966_v56, %v965_v11  ;;  %1413 = vrcp.f32 %v999_v31  ;;  %v973_v32 = vrot.slane %v972_v51, 1  ;;  %v1797_v63 = vadd.f32 %v895_v25, %v894_v61 }
 0x383   :  { %v1001_v34 = vmul.f32 8.0, %v1790_v35  ;;  %v902_v0 = vrot.slane %v901_v43, 1  ;;  %v908_v48 = vadd.f32 %v907_v60, %v906_v29  ;;  %v990_v2 = vmul.f32 %v1402_v20, %v978_v33 }
 0x384   :  { %1415 = vrcp.f32 %v967_v59  ;;  %v974_v3 = vadd.f32 %v973_v32, %v972_v51  ;;  %v1023_v4 = vand.u32 2147483647, %v1785_v47  ;;  %v1024_v6 = vand.u32 2147483647, %v1776_v18 }
 0x385   :  { %1417 = vrcp.f32 %v1001_v34  ;;  %v909_v8 = vrot.slane %v908_v48, 1  ;;  %v979_v9 = vmul.f32 %v1792_v57, %v1792_v57  ;;  %v1002_v28 = vmul.f32 8.0, %v990_v2 }
 0x386   :  { %v1408_v50 = vpop.eup %1407  ;;  %v1025_v52 = vand.u32 2147483647, %v1790_v35  ;;  %1419 = vrcp.f32 %v974_v3  ;;  %v1026_v41 = vand.u32 2147483647, %v990_v2  ;;  %vm1805_vm5 = vcmp.lt.f32.partialorder %v1023_v4, 0.0001 }
 0x387   :  { %v1410_v14 = vpop.eup %1409  ;;  %v1010_v16 = vmul.f32 %v1408_v50, %v1758_v36  ;;  %v1809_v19 = vadd.f32 %v902_v0, %v901_v43  ;;  %1421 = vrcp.f32 %v1002_v28  ;;  %vm1811_vm7 = vcmp.lt.f32.partialorder %v1024_v6, 0.0001 }
 0x388   :  { %v992_v53 = vmul.f32 %v1410_v14, %v979_v9  ;;  %vm1815_vm8 = vcmp.lt.f32.partialorder %v1025_v52, 0.0001  ;;  %v1819_v36 = vadd.f32 %v909_v8, %v908_v48  ;;  %v1039_v13 = vsel %vm1805_vm5, 0.0001, %v1785_v47 }
 0x389   :  { %v1048_v21 = vand.u32 2147483647, %v1010_v16  ;;  %v980_v10 = vmul.f32 %v1797_v63, %v1797_v63  ;;  %vm1826_vm11 = vcmp.lt.f32.partialorder %v1026_v41, 0.0001  ;;  %v1041_v37 = vsel %vm1815_vm8, 0.0001, %v1790_v35 }
 0x38a   :  { %v1003_v24 = vmul.f32 8.0, %v992_v53  ;;  %v1027_v26 = vand.u32 2147483647, %v992_v53  ;;  %v981_v61 = vmul.f32 %v1809_v19, %v1809_v19  ;;  %v1040_v40 = vsel %vm1811_vm7, 0.0001, %v1776_v18 }
 0x38b   :  { %v1412_v44 = vpop.eup %1411  ;;  %vm1842_vm13 = vcmp.lt.f32.partialorder %v1048_v21, 0.0001  ;;  %v1080_v45 = vsel %vm1079_vm2, %v1040_v40, %v1039_v13  ;;  %v982_v46 = vmul.f32 %v1819_v36, %v1819_v36  ;;  %v1042_v18 = vsel %vm1826_vm11, 0.0001, %v990_v2 }
 0x38c   :  { %1423 = vrcp.f32 %v1003_v24  ;;  %vm1835_vm12 = vcmp.lt.f32.partialorder %v1027_v26, 0.0001  ;;  %v1414_v42 = vpop.eup %1413  ;;  %v994_v20 = vmul.f32 %v1412_v44, %v980_v10  ;;  %v1082_v30 = vsel %vm1081_vm3, %v1041_v37, %v1080_v45 }
 0x38d   :  { %v1043_v5 = vsel %vm1835_vm12, 0.0001, %v992_v53  ;;  %v1008_v11 = vmul.f32 %v1414_v42, %v1767_v27  ;;  %v1084_v25 = vsel %vm1083_vm4, %v1042_v18, %v1082_v30  ;;  %v1064_v56 = vsel %vm1842_vm13, 0.0001, %v1010_v16 }
 0x38e   :  { %v1416_v15 = vpop.eup %1415  ;;  %v1004_v49 = vmul.f32 8.0, %v994_v20  ;;  %v1028_v38 = vand.u32 2147483647, %v994_v20  ;;  %v1086_v43 = vsel %vm1085_vm6, %v1043_v5, %v1084_v25 }
 0x38f   :  { %v1418_v22 = vpop.eup %1417  ;;  %v996_v47 = vmul.f32 %v1416_v15, %v981_v61  ;;  %v1047_v55 = vand.u32 2147483647, %v1008_v11 }
 0x390   :  { %v1012_v54 = vmul.f32 %v1418_v22, %v1778_v1  ;;  %v1420_v27 = vpop.eup %1419  ;;  %1425 = vrcp.f32 %v1004_v49  ;;  %vm1860_vm15 = vcmp.lt.f32.partialorder %v1028_v38, 0.0001 }
 0x391   :  { %v1005_v29 = vmul.f32 8.0, %v996_v47  ;;  %v1029_v31 = vand.u32 2147483647, %v996_v47  ;;  %v1422_v51 = vpop.eup %1421  ;;  %v998_v59 = vmul.f32 %v1420_v27, %v982_v46  ;;  %vm1055_vm5 = vcmp.lt.f32.partialorder %v1047_v55, 0.0001 }
 0x392   :  { %v1049_v60 = vand.u32 2147483647, %v1012_v54  ;;  %v1044_v1 = vsel %vm1860_vm15, 0.0001, %v994_v20  ;;  %v1014_v33 = vmul.f32 %v1422_v51, %v1782_v39  ;;  %v1063_v34 = vsel %vm1055_vm5, 0.0001, %v1008_v11 }
 0x393   :  { %1427 = vrcp.f32 %v1005_v29  ;;  %vm1037_vm7 = vcmp.lt.f32.partialorder %v1029_v31, 0.0001  ;;  %v1006_v32 = vmul.f32 8.0, %v998_v59  ;;  %v1102_v0 = vsel %vm1079_vm2, %v1064_v56, %v1063_v34 }
 0x394   :  { %vm1057_vm8 = vcmp.lt.f32.partialorder %v1049_v60, 0.0001  ;;  %v1030_v48 = vand.u32 2147483647, %v998_v59  ;;  %v1050_v2 = vand.u32 2147483647, %v1014_v33  ;;  %v1088_v6 = vsel %vm1087_vm9, %v1044_v1, %v1086_v43 }
 0x395   :  { %v1065_v3 = vsel %vm1057_vm8, 0.0001, %v1012_v54  ;;  %v1045_v4 = vsel %vm1037_vm7, 0.0001, %v996_v47  ;;  %1429 = vrcp.f32 %v1006_v32 }
 0x396   :  { %v1424_v50 = vpop.eup %1423  ;;  %v1103_v8 = vsel %vm1081_vm3, %v1065_v3, %v1102_v0  ;;  %vm1038_vm11 = vcmp.lt.f32.partialorder %v1030_v48, 0.0001  ;;  %v1090_v39 = vsel %vm1089_vm10, %v1045_v4, %v1088_v6  ;;  %vm1058_vm12 = vcmp.lt.f32.partialorder %v1050_v2, 0.0001 }
 0x397   :  { %v1016_v9 = vmul.f32 %v1424_v50, %v1792_v57  ;;  %v1046_v28 = vsel %vm1038_vm11, 0.0001, %v998_v59  ;;  %v1066_v52 = vsel %vm1058_vm12, 0.0001, %v1014_v33 }
 0x398   :  { %v1092_v14 = vsel %vm1091_vm14, %v1046_v28, %v1090_v39  ;;  %v1104_v41 = vsel %vm1083_vm4, %v1066_v52, %v1103_v8 }
 0x399   :  { %v1051_v16 = vand.u32 2147483647, %v1016_v9 }
 0x39a   :  { %v1426_v17 = vpop.eup %1425 }
 0x39b   :  { %vm1059_vm2 = vcmp.lt.f32.partialorder %v1051_v16, 0.0001  ;;  %v1018_v53 = vmul.f32 %v1426_v17, %v1797_v63 }
 0x39c   :  { %v1067_v21 = vsel %vm1059_vm2, 0.0001, %v1016_v9 }
 0x39d   :  { %v1428_v23 = vpop.eup %1427  ;;  %v1105_v62 = vsel %vm1085_vm6, %v1067_v21, %v1104_v41  ;;  %v1052_v26 = vand.u32 2147483647, %v1018_v53 }
 0x39e   :  { %v1020_v24 = vmul.f32 %v1428_v23, %v1809_v19 }
 0x39f   :  { %v1430_v57 = vpop.eup %1429  ;;  %vm1060_vm3 = vcmp.lt.f32.partialorder %v1052_v26, 0.0001 }
 0x3a0   :  { %v1053_v13 = vand.u32 2147483647, %v1020_v24  ;;  %v1022_v10 = vmul.f32 %v1430_v57, %v1819_v36  ;;  %v1068_v58 = vsel %vm1060_vm3, 0.0001, %v1018_v53 }
 0x3a1   :  { %v1106_v37 = vsel %vm1087_vm9, %v1068_v58, %v1105_v62 }
 0x3a2   :  { %vm1061_vm13 = vcmp.lt.f32.partialorder %v1053_v13, 0.0001  ;;  %v1054_v44 = vand.u32 2147483647, %v1022_v10 }
 0x3a3   :  { %v1069_v61 = vsel %vm1061_vm13, 0.0001, %v1020_v24 }
 0x3a4   :  { %v1107_v63 = vsel %vm1089_vm10, %v1069_v61, %v1106_v37  ;;  %vm1062_vm4 = vcmp.lt.f32.partialorder %v1054_v44, 0.0001 }
 0x3a5   :  { %v1070_v12 = vsel %vm1062_vm4, 0.0001, %v1022_v10 }
 0x3a6   :  { %v1108_v40 = vsel %vm1091_vm14, %v1070_v12, %v1107_v63 }
 0x3a7   :  { %1109 = vrot.lane.b32.xlu0 %v1108_v40, %s1432_s1 }
 0x419   :  { %v1110_v19 = vpop.permute.xlu0 %1109 }
 0x41a   :  { %v1112_v42 = vsel %vm56_vm0, %v1092_v14, %v1110_v19 }
 0x41b   :  { %1113 = vst.msk [vmem:[%s1895_s9] sm:$0xff] %vm353_vm1, %v1112_v42 }

</bundles_post_ra>
